<compile_context>
chip_gen: v6e
topology: v6e:2x2x1
jax: 0.10.0
libtpu: 0.0.40
codegen_flags: <defaults>
</compile_context>

<pallas_src>
import functools

import jax
import jax.numpy as jnp
from jax.experimental import pallas as pl
from jax.experimental.pallas import tpu as pltpu


# ----------------------------------------------------------------------------
# Shared per-element compute: out = A(X,Y)*X + B(X,Y)*Y with chamber selection.
# ----------------------------------------------------------------------------
def _b2_compute(X, Y, c_ref):
    X = X.astype(jnp.float32)
    Y = Y.astype(jnp.float32)
    xp = X >= 0.0
    yp = Y >= 0.0
    xy = jnp.abs(X) >= jnp.abs(Y)

    def row(i):                       # (1, tg) coefficient row, broadcasts over batch
        return c_ref[i:i + 1, :]

    # A coefficient (multiplies X).
    a = jnp.where(
        xy,
        jnp.where(xp, row(0), row(1)),
        jnp.where(xp,
                  jnp.where(yp, row(2), row(3)),
                  jnp.where(yp, row(4), row(5))),
    )
    # B coefficient (multiplies Y).
    b = jnp.where(
        xy,
        jnp.where(xp,
                  jnp.where(yp, row(6), row(7)),
                  jnp.where(yp, row(8), row(9))),
        jnp.where(yp, row(10), row(11)),
    )
    return a * X + b * Y


# ----------------------------------------------------------------------------
# Kernel bodies.
# ----------------------------------------------------------------------------
def _b2_kernel_split(x_ref, y_ref, c_ref, o_ref):
    """Fallback: X and Y arrive as separate de-interleaved blocks."""
    o_ref[...] = _b2_compute(x_ref[...], y_ref[...], c_ref).astype(o_ref.dtype)


def _b2_kernel_fused_ref(inp_ref, c_ref, o_ref):
    """Preferred: one interleaved (tb, 2*tg) block; stride-2 ref loads split X/Y."""
    tg = o_ref.shape[1]
    X = inp_ref[:, pl.ds(0, tg, stride=2)]
    Y = inp_ref[:, pl.ds(1, tg, stride=2)]
    o_ref[...] = _b2_compute(X, Y, c_ref).astype(o_ref.dtype)


def _b2_kernel_fused_val(inp_ref, c_ref, o_ref):
    """Alternate fused variant: load the whole block, strided slice on the value."""
    v = inp_ref[...]
    o_ref[...] = _b2_compute(v[:, 0::2], v[:, 1::2], c_ref).astype(o_ref.dtype)


# ----------------------------------------------------------------------------
# Wrapper helpers.
# ----------------------------------------------------------------------------
def _b2_coeffs(params, g_pad):
    """params (G, 8) -> (12, g_pad) table of per-chamber A/B coefficients."""
    P = params.astype(jnp.float32)
    P0, P1, P2, P3, P4, P5, P6, P7 = (P[:, i] for i in range(8))
    rows = [
        P0,        # 0:  A | |X|>=|Y|, X>=0
        -P4,       # 1:  A | |X|>=|Y|, X<0
        P1 - P2,   # 2:  A | |X|<|Y|,  X>=0, Y>=0
        P7 - P6,   # 3:  A | |X|<|Y|,  X>=0, Y<0
        P2 - P3,   # 4:  A | |X|<|Y|,  X<0,  Y>=0
        P6 - P5,   # 5:  A | |X|<|Y|,  X<0,  Y<0
        P1 - P0,   # 6:  B | |X|>=|Y|, X>=0, Y>=0
        P0 - P7,   # 7:  B | |X|>=|Y|, X>=0, Y<0
        P3 - P4,   # 8:  B | |X|>=|Y|, X<0,  Y>=0
        P4 - P5,   # 9:  B | |X|>=|Y|, X<0,  Y<0
        P2,        # 10: B | |X|<|Y|,  Y>=0
        -P6,       # 11: B | |X|<|Y|,  Y<0
    ]
    C = jnp.stack(rows, axis=0)                       # (12, G)
    if g_pad > C.shape[1]:
        C = jnp.pad(C, ((0, 0), (0, g_pad - C.shape[1])))
    return C


def _tpu_defaults():
    """(target_block_elems, vmem_limit_bytes) tuned per TPU generation."""
    kind = ""
    try:
        kind = jax.devices()[0].device_kind.lower()
    except Exception:
        pass
    if "v7" in kind or "7x" in kind:
        # 64 MiB VMEM / TC: keep double-buffered in+out blocks well under the limit.
        return 512 * 1024, 48 * 1024 * 1024
    if "v6" in kind or "v5" in kind:
        # 128 MiB VMEM: bigger blocks amortize the ~0.35us per-grid-step overhead.
        return 1024 * 1024, 64 * 1024 * 1024
    return 512 * 1024, 48 * 1024 * 1024


def _choose_tiles(B, Gp, batch_tile, group_tile, target_block_elems):
    """Pick (tb, tg). Gp is already padded to a multiple of 128."""
    # Lane tile: multiple of 128.
    if group_tile is not None:
        tg = min(Gp, max(128, (int(group_tile) // 128) * 128))
    else:
        tg = min(Gp, 2048)

    # Batch tile: multiple of 8 (or the full batch), tb*tg ~= target_block_elems.
    if batch_tile is not None:
        tb = max(1, min(int(batch_tile), B))
        if tb < B and tb % 8:
            tb = min(B, max(8, (tb // 8) * 8))
    else:
        tb = max(8, (target_block_elems // max(tg, 1) // 8) * 8)
        if tb >= B:
            tb = B

    # Guarantee >=2 blocks on a parallel axis where possible (v7x has 2 TCs/chip).
    if pl.cdiv(B, tb) * pl.cdiv(Gp, tg) == 1:
        if B >= 16:
            tb = max(8, ((B // 2) // 8) * 8)
        elif Gp >= 256:
            tg = max(128, ((Gp // 2) // 128) * 128)
    return tb, tg


# ----------------------------------------------------------------------------
# pallas_call wrapper (jitted so the fallback's X/Y slices can input-fuse).
# ----------------------------------------------------------------------------
def _pallas_forward(inp, params, *, tb, tg, impl, vmem_limit):
    B, two_g = inp.shape
    G = two_g // 2
    Gp = ((G + 127) // 128) * 128

    coeffs = _b2_coeffs(params, Gp)                   # (12, Gp)
    if Gp != G:
        # Keep the output lane-dense: pad the group axis up to a multiple of 128.
        inp = jnp.pad(inp.reshape(B, G, 2),
                      ((0, 0), (0, Gp - G), (0, 0))).reshape(B, 2 * Gp)

    # Grid: group axis j OUTER, batch axis i INNER -> coeff block index (0, j) is
    # invariant along the inner axis, so its tile stays resident (no re-DMA per step).
    grid = (pl.cdiv(Gp, tg), pl.cdiv(B, tb))
    coeff_spec = pl.BlockSpec((12, tg), lambda j, i: (0, j))
    out_spec = pl.BlockSpec((tb, tg), lambda j, i: (i, j))
    out_shape = jax.ShapeDtypeStruct((B, Gp), inp.dtype)
    dim_sem = ("parallel", "parallel")

    if impl == "split":
        pairs = inp.reshape(B, Gp, 2)
        X = pairs[:, :, 0]
        Y = pairs[:, :, 1]
        out = pl.pallas_call(
            _b2_kernel_split,
            out_shape=out_shape,
            grid_spec=pltpu.PrefetchScalarGridSpec(
                num_scalar_prefetch=0,
                grid=grid,
                in_specs=[pl.BlockSpec((tb, tg), lambda j, i: (i, j)),
                          pl.BlockSpec((tb, tg), lambda j, i: (i, j)),
                          coeff_spec],
                out_specs=out_spec),
            compiler_params=pltpu.CompilerParams(
                dimension_semantics=dim_sem,
                vmem_limit_bytes=vmem_limit,
                # Let XLA fold the stride-2 de-interleave slices into the input
                # pipeline instead of materializing X / Y in HBM.
                allow_input_fusion=[True, True, False]),
        )(X, Y, coeffs)
    else:
        kernel = _b2_kernel_fused_ref if impl == "fused_ref" else _b2_kernel_fused_val
        out = pl.pallas_call(
            kernel,
            out_shape=out_shape,
            grid_spec=pltpu.PrefetchScalarGridSpec(
                num_scalar_prefetch=0,
                grid=grid,
                in_specs=[pl.BlockSpec((tb, 2 * tg), lambda j, i: (i, j)),
                          coeff_spec],
                out_specs=out_spec),
            compiler_params=pltpu.CompilerParams(
                dimension_semantics=dim_sem,
                vmem_limit_bytes=vmem_limit),
        )(inp, coeffs)

    if Gp != G:
        out = out[:, :G]
    return out


_b2_forward_jit = jax.jit(
    _pallas_forward, static_argnames=("tb", "tg", "impl", "vmem_limit"))


# ----------------------------------------------------------------------------
# Pure-JAX reference (mirrors the PyTorch B2Activation.forward exactly).
# ----------------------------------------------------------------------------
def b2_activation_ref(inp, params):
    B = inp.shape[0]
    G = params.shape[0]
    pairs = inp.reshape(B, G, 2)
    X = pairs[:, :, 0]
    Y = pairs[:, :, 1]
    P = [params[:, i][None, :] for i in range(8)]
    XP = X >= 0
    YP = Y >= 0
    XY = jnp.abs(X) >= jnp.abs(Y)
    out = jnp.where(
        XP,
        jnp.where(
            YP,
            jnp.where(XY, P[0] * X + (P[1] - P[0]) * Y, P[2] * Y + (P[1] - P[2]) * X),
            jnp.where(XY, P[0] * X + (P[0] - P[7]) * Y, -P[6] * Y + (P[7] - P[6]) * X)),
        jnp.where(
            YP,
            jnp.where(XY, -P[4] * X + (P[3] - P[4]) * Y, P[2] * Y + (P[2] - P[3]) * X),
            jnp.where(XY, -P[4] * X + (P[4] - P[5]) * Y, -P[6] * Y + (P[6] - P[5]) * X)),
    )
    return out


# ----------------------------------------------------------------------------
# One-time probe: prefer the single-DMA fused kernel if it lowers & is correct
# on this backend; otherwise fall back to the split-X/Y kernel.
# ----------------------------------------------------------------------------
_IMPL = None


def _probe_impl():
    key = jax.random.PRNGKey(42)
    k_in, k_par = jax.random.split(key)
    B, G = 16, 256
    params = (jax.random.randint(k_par, (G, 8), 0, 2) * 2 - 1).astype(jnp.float32)
    inp = jax.random.normal(k_in, (B, 2 * G), jnp.float32)
    ref = b2_activation_ref(inp, params)
    for impl in ("fused_ref", "fused_val"):
        try:
            out = jax.block_until_ready(
                _b2_forward_jit(inp, params, tb=8, tg=128, impl=impl,
                                vmem_limit=48 * 1024 * 1024))
            if out.shape == ref.shape and bool(
                    jnp.allclose(out, ref, atol=1e-5, rtol=1e-5)):
                return impl
        except Exception:
            continue
    return "split"


def _get_impl():
    global _IMPL
    if _IMPL is None:
        _IMPL = _probe_impl()
    return _IMPL


# ----------------------------------------------------------------------------
# Public entry point.
# ----------------------------------------------------------------------------
def b2_activation(inp, params, *, batch_tile=None, group_tile=None,
                  target_block_elems=None, impl=None):
    """inp: (B, 2*G); params: (G, 8). Returns (B, G), matching B2Activation.forward."""
    B, two_g = inp.shape
    G = two_g // 2
    assert two_g == 2 * G, "input feature dim must be 2 * input_groups"
    assert params.shape == (G, 8)

    if impl is None:
        impl = _get_impl()
    tbe, vmem_limit = _tpu_defaults()
    if target_block_elems is not None:
        tbe = int(target_block_elems)

    Gp = ((G + 127) // 128) * 128
    tb, tg = _choose_tiles(B, Gp, batch_tile, group_tile, tbe)
    return _b2_forward_jit(inp, params, tb=tb, tg=tg, impl=impl,
                           vmem_limit=vmem_limit)


if __name__ == "__main__":
    key = jax.random.PRNGKey(0)
    k_inp, k_par, k_inp2, k_par3, k_inp3 = jax.random.split(key, 5)

    batch = 16
    input_groups = 128                 # module input dim = 2 * input_groups

    # Mirror torch init: random +/-1 entries, shape (input_groups, 8).
    params = (jax.random.randint(k_par, (input_groups, 8), 0, 2) * 2 - 1).astype(jnp.float32)
    inp = jax.random.normal(k_inp, (batch, 2 * input_groups), jnp.float32)

    out = jax.block_until_ready(b2_activation(inp, params))
    ref = b2_activation_ref(inp, params)
    assert out.shape == (batch, input_groups)
    assert jnp.allclose(out, ref, atol=1e-6, rtol=1e-6)

    # Multi-block grid with a partial tail block along the batch axis.
    batch2 = 20
    inp2 = jax.random.normal(k_inp2, (batch2, 2 * input_groups), jnp.float32)
    out2 = jax.block_until_ready(b2_activation(inp2, params, batch_tile=8))
    ref2 = b2_activation_ref(inp2, params)
    assert jnp.allclose(out2, ref2, atol=1e-6, rtol=1e-6)

    # Non-128-aligned group count exercises the lane-dense padding path.
    groups3 = 96
    params3 = (jax.random.randint(k_par3, (groups3, 8), 0, 2) * 2 - 1).astype(jnp.float32)
    inp3 = jax.random.normal(k_inp3, (8, 2 * groups3), jnp.float32)
    out3 = jax.block_until_ready(b2_activation(inp3, params3))
    ref3 = b2_activation_ref(inp3, params3)
    assert jnp.allclose(out3, ref3, atol=1e-6, rtol=1e-6)

    print("KERNEL_OK")
</pallas_src>

<mosaic_0001>
module attributes {stable_mosaic.version = 11 : i64} {
  func.func @_b2_kernel_fused_ref(%arg0: i32, %arg1: i32, %arg2: memref<8x256xf32, #tpu.memory_space<vmem>>, %arg3: memref<12x128xf32, #tpu.memory_space<vmem>>, %arg4: memref<8x128xf32, #tpu.memory_space<vmem>>) attributes {dimension_semantics = [#tpu.dimension_semantics<parallel>, #tpu.dimension_semantics<parallel>], iteration_bounds = array<i64: 2, 2>, scalar_prefetch = 0 : i64, scratch_operands = 0 : i64, tpu.core_type = #tpu.core_type<tc>, window_params = [{transform_indices = @transform_0, window_bounds = array<i64: 8, 256>}, {transform_indices = @transform_1, window_bounds = array<i64: 12, 128>}, {transform_indices = @transform_2, window_bounds = array<i64: 8, 128>}]} {
    %c0 = arith.constant 0 : index
    %c0_0 = arith.constant 0 : index
    %0 = tpu.strided_load %arg2[%c0, %c0_0] {strides = array<i32: 1, 2>} : memref<8x256xf32, #tpu.memory_space<vmem>>, vector<8x128xf32>
    %c0_1 = arith.constant 0 : index
    %c1 = arith.constant 1 : index
    %1 = tpu.strided_load %arg2[%c0_1, %c1] {strides = array<i32: 1, 2>} : memref<8x256xf32, #tpu.memory_space<vmem>>, vector<8x128xf32>
    %cst = arith.constant 0.000000e+00 : f32
    %2 = vector.broadcast %cst : f32 to vector<8x128xf32>
    %3 = arith.cmpf oge, %0, %2 : vector<8x128xf32>
    %cst_2 = arith.constant 0.000000e+00 : f32
    %4 = vector.broadcast %cst_2 : f32 to vector<8x128xf32>
    %5 = arith.cmpf oge, %1, %4 : vector<8x128xf32>
    %6 = math.absf %0 : vector<8x128xf32>
    %7 = math.absf %1 : vector<8x128xf32>
    %8 = arith.cmpf oge, %6, %7 : vector<8x128xf32>
    %c0_3 = arith.constant 0 : index
    %c0_4 = arith.constant 0 : index
    %9 = vector.load %arg3[%c0_3, %c0_4] : memref<12x128xf32, #tpu.memory_space<vmem>>, vector<1x128xf32>
    %c1_5 = arith.constant 1 : index
    %c0_6 = arith.constant 0 : index
    %10 = vector.load %arg3[%c1_5, %c0_6] : memref<12x128xf32, #tpu.memory_space<vmem>>, vector<1x128xf32>
    %11 = vector.shape_cast %9 : vector<1x128xf32> to vector<1x128xf32>
    %12 = vector.broadcast %11 : vector<1x128xf32> to vector<8x128xf32>
    %13 = vector.shape_cast %10 : vector<1x128xf32> to vector<1x128xf32>
    %14 = vector.broadcast %13 : vector<1x128xf32> to vector<8x128xf32>
    %15 = arith.select %3, %12, %14 : vector<8x128xi1>, vector<8x128xf32>
    %c2 = arith.constant 2 : index
    %c0_7 = arith.constant 0 : index
    %16 = vector.load %arg3[%c2, %c0_7] : memref<12x128xf32, #tpu.memory_space<vmem>>, vector<1x128xf32>
    %c3 = arith.constant 3 : index
    %c0_8 = arith.constant 0 : index
    %17 = vector.load %arg3[%c3, %c0_8] : memref<12x128xf32, #tpu.memory_space<vmem>>, vector<1x128xf32>
    %18 = vector.shape_cast %16 : vector<1x128xf32> to vector<1x128xf32>
    %19 = vector.broadcast %18 : vector<1x128xf32> to vector<8x128xf32>
    %20 = vector.shape_cast %17 : vector<1x128xf32> to vector<1x128xf32>
    %21 = vector.broadcast %20 : vector<1x128xf32> to vector<8x128xf32>
    %22 = arith.select %5, %19, %21 : vector<8x128xi1>, vector<8x128xf32>
    %c4 = arith.constant 4 : index
    %c0_9 = arith.constant 0 : index
    %23 = vector.load %arg3[%c4, %c0_9] : memref<12x128xf32, #tpu.memory_space<vmem>>, vector<1x128xf32>
    %c5 = arith.constant 5 : index
    %c0_10 = arith.constant 0 : index
    %24 = vector.load %arg3[%c5, %c0_10] : memref<12x128xf32, #tpu.memory_space<vmem>>, vector<1x128xf32>
    %25 = vector.shape_cast %23 : vector<1x128xf32> to vector<1x128xf32>
    %26 = vector.broadcast %25 : vector<1x128xf32> to vector<8x128xf32>
    %27 = vector.shape_cast %24 : vector<1x128xf32> to vector<1x128xf32>
    %28 = vector.broadcast %27 : vector<1x128xf32> to vector<8x128xf32>
    %29 = arith.select %5, %26, %28 : vector<8x128xi1>, vector<8x128xf32>
    %30 = arith.select %3, %22, %29 : vector<8x128xi1>, vector<8x128xf32>
    %31 = arith.select %8, %15, %30 : vector<8x128xi1>, vector<8x128xf32>
    %c6 = arith.constant 6 : index
    %c0_11 = arith.constant 0 : index
    %32 = vector.load %arg3[%c6, %c0_11] : memref<12x128xf32, #tpu.memory_space<vmem>>, vector<1x128xf32>
    %c7 = arith.constant 7 : index
    %c0_12 = arith.constant 0 : index
    %33 = vector.load %arg3[%c7, %c0_12] : memref<12x128xf32, #tpu.memory_space<vmem>>, vector<1x128xf32>
    %34 = vector.shape_cast %32 : vector<1x128xf32> to vector<1x128xf32>
    %35 = vector.broadcast %34 : vector<1x128xf32> to vector<8x128xf32>
    %36 = vector.shape_cast %33 : vector<1x128xf32> to vector<1x128xf32>
    %37 = vector.broadcast %36 : vector<1x128xf32> to vector<8x128xf32>
    %38 = arith.select %5, %35, %37 : vector<8x128xi1>, vector<8x128xf32>
    %c8 = arith.constant 8 : index
    %c0_13 = arith.constant 0 : index
    %39 = vector.load %arg3[%c8, %c0_13] : memref<12x128xf32, #tpu.memory_space<vmem>>, vector<1x128xf32>
    %c9 = arith.constant 9 : index
    %c0_14 = arith.constant 0 : index
    %40 = vector.load %arg3[%c9, %c0_14] : memref<12x128xf32, #tpu.memory_space<vmem>>, vector<1x128xf32>
    %41 = vector.shape_cast %39 : vector<1x128xf32> to vector<1x128xf32>
    %42 = vector.broadcast %41 : vector<1x128xf32> to vector<8x128xf32>
    %43 = vector.shape_cast %40 : vector<1x128xf32> to vector<1x128xf32>
    %44 = vector.broadcast %43 : vector<1x128xf32> to vector<8x128xf32>
    %45 = arith.select %5, %42, %44 : vector<8x128xi1>, vector<8x128xf32>
    %46 = arith.select %3, %38, %45 : vector<8x128xi1>, vector<8x128xf32>
    %c10 = arith.constant 10 : index
    %c0_15 = arith.constant 0 : index
    %47 = vector.load %arg3[%c10, %c0_15] : memref<12x128xf32, #tpu.memory_space<vmem>>, vector<1x128xf32>
    %c11 = arith.constant 11 : index
    %c0_16 = arith.constant 0 : index
    %48 = vector.load %arg3[%c11, %c0_16] : memref<12x128xf32, #tpu.memory_space<vmem>>, vector<1x128xf32>
    %49 = vector.shape_cast %47 : vector<1x128xf32> to vector<1x128xf32>
    %50 = vector.broadcast %49 : vector<1x128xf32> to vector<8x128xf32>
    %51 = vector.shape_cast %48 : vector<1x128xf32> to vector<1x128xf32>
    %52 = vector.broadcast %51 : vector<1x128xf32> to vector<8x128xf32>
    %53 = arith.select %5, %50, %52 : vector<8x128xi1>, vector<8x128xf32>
    %54 = arith.select %8, %46, %53 : vector<8x128xi1>, vector<8x128xf32>
    %55 = arith.mulf %31, %0 : vector<8x128xf32>
    %56 = arith.mulf %54, %1 : vector<8x128xf32>
    %57 = arith.addf %55, %56 : vector<8x128xf32>
    %c0_17 = arith.constant 0 : index
    %c0_18 = arith.constant 0 : index
    %58 = vector.load %arg4[%c0_17, %c0_18] : memref<8x128xf32, #tpu.memory_space<vmem>>, vector<8x128xf32>
    tpu.vector_store %arg4[%c0_17, %c0_18], %57 {strides = array<i32>} : memref<8x128xf32, #tpu.memory_space<vmem>>, vector<8x128xf32>,
    return
  }
  func.func @transform_0(%arg0: i32, %arg1: i32) -> (i32, i32) {
    %c0_i32 = arith.constant 0 : i32
    return %arg1, %arg0 : i32, i32
  }
  func.func @transform_1(%arg0: i32, %arg1: i32) -> (i32, i32) {
    %c0_i32 = arith.constant 0 : i32
    %c0_i32_0 = arith.constant 0 : i32
    return %c0_i32, %arg0 : i32, i32
  }
  func.func @transform_2(%arg0: i32, %arg1: i32) -> (i32, i32) {
    %c0_i32 = arith.constant 0 : i32
    return %arg1, %arg0 : i32, i32
  }
}

module attributes {stable_mosaic.version = 11 : i64} {
  func.func @_b2_kernel_split(%arg0: i32, %arg1: i32, %arg2: memref<8x128xf32, #tpu.memory_space<vmem>>, %arg3: memref<8x128xf32, #tpu.memory_space<vmem>>, %arg4: memref<12x128xf32, #tpu.memory_space<vmem>>, %arg5: memref<8x128xf32, #tpu.memory_space<vmem>>) attributes {dimension_semantics = [#tpu.dimension_semantics<parallel>, #tpu.dimension_semantics<parallel>], iteration_bounds = array<i64: 1, 2>, scalar_prefetch = 0 : i64, scratch_operands = 0 : i64, tpu.core_type = #tpu.core_type<tc>, window_params = [{transform_indices = @transform_0, window_bounds = array<i64: 8, 128>}, {transform_indices = @transform_1, window_bounds = array<i64: 8, 128>}, {transform_indices = @transform_2, window_bounds = array<i64: 12, 128>}, {transform_indices = @transform_3, window_bounds = array<i64: 8, 128>}]} {
    %c0 = arith.constant 0 : index
    %c0_0 = arith.constant 0 : index
    %0 = vector.load %arg2[%c0, %c0_0] : memref<8x128xf32, #tpu.memory_space<vmem>>, vector<8x128xf32>
    %c0_1 = arith.constant 0 : index
    %c0_2 = arith.constant 0 : index
    %1 = vector.load %arg3[%c0_1, %c0_2] : memref<8x128xf32, #tpu.memory_space<vmem>>, vector<8x128xf32>
    %cst = arith.constant 0.000000e+00 : f32
    %2 = vector.broadcast %cst : f32 to vector<8x128xf32>
    %3 = arith.cmpf oge, %0, %2 : vector<8x128xf32>
    %cst_3 = arith.constant 0.000000e+00 : f32
    %4 = vector.broadcast %cst_3 : f32 to vector<8x128xf32>
    %5 = arith.cmpf oge, %1, %4 : vector<8x128xf32>
    %6 = math.absf %0 : vector<8x128xf32>
    %7 = math.absf %1 : vector<8x128xf32>
    %8 = arith.cmpf oge, %6, %7 : vector<8x128xf32>
    %c0_4 = arith.constant 0 : index
    %c0_5 = arith.constant 0 : index
    %9 = vector.load %arg4[%c0_4, %c0_5] : memref<12x128xf32, #tpu.memory_space<vmem>>, vector<1x128xf32>
    %c1 = arith.constant 1 : index
    %c0_6 = arith.constant 0 : index
    %10 = vector.load %arg4[%c1, %c0_6] : memref<12x128xf32, #tpu.memory_space<vmem>>, vector<1x128xf32>
    %11 = vector.shape_cast %9 : vector<1x128xf32> to vector<1x128xf32>
    %12 = vector.broadcast %11 : vector<1x128xf32> to vector<8x128xf32>
    %13 = vector.shape_cast %10 : vector<1x128xf32> to vector<1x128xf32>
    %14 = vector.broadcast %13 : vector<1x128xf32> to vector<8x128xf32>
    %15 = arith.select %3, %12, %14 : vector<8x128xi1>, vector<8x128xf32>
    %c2 = arith.constant 2 : index
    %c0_7 = arith.constant 0 : index
    %16 = vector.load %arg4[%c2, %c0_7] : memref<12x128xf32, #tpu.memory_space<vmem>>, vector<1x128xf32>
    %c3 = arith.constant 3 : index
    %c0_8 = arith.constant 0 : index
    %17 = vector.load %arg4[%c3, %c0_8] : memref<12x128xf32, #tpu.memory_space<vmem>>, vector<1x128xf32>
    %18 = vector.shape_cast %16 : vector<1x128xf32> to vector<1x128xf32>
    %19 = vector.broadcast %18 : vector<1x128xf32> to vector<8x128xf32>
    %20 = vector.shape_cast %17 : vector<1x128xf32> to vector<1x128xf32>
    %21 = vector.broadcast %20 : vector<1x128xf32> to vector<8x128xf32>
    %22 = arith.select %5, %19, %21 : vector<8x128xi1>, vector<8x128xf32>
    %c4 = arith.constant 4 : index
    %c0_9 = arith.constant 0 : index
    %23 = vector.load %arg4[%c4, %c0_9] : memref<12x128xf32, #tpu.memory_space<vmem>>, vector<1x128xf32>
    %c5 = arith.constant 5 : index
    %c0_10 = arith.constant 0 : index
    %24 = vector.load %arg4[%c5, %c0_10] : memref<12x128xf32, #tpu.memory_space<vmem>>, vector<1x128xf32>
    %25 = vector.shape_cast %23 : vector<1x128xf32> to vector<1x128xf32>
    %26 = vector.broadcast %25 : vector<1x128xf32> to vector<8x128xf32>
    %27 = vector.shape_cast %24 : vector<1x128xf32> to vector<1x128xf32>
    %28 = vector.broadcast %27 : vector<1x128xf32> to vector<8x128xf32>
    %29 = arith.select %5, %26, %28 : vector<8x128xi1>, vector<8x128xf32>
    %30 = arith.select %3, %22, %29 : vector<8x128xi1>, vector<8x128xf32>
    %31 = arith.select %8, %15, %30 : vector<8x128xi1>, vector<8x128xf32>
    %c6 = arith.constant 6 : index
    %c0_11 = arith.constant 0 : index
    %32 = vector.load %arg4[%c6, %c0_11] : memref<12x128xf32, #tpu.memory_space<vmem>>, vector<1x128xf32>
    %c7 = arith.constant 7 : index
    %c0_12 = arith.constant 0 : index
    %33 = vector.load %arg4[%c7, %c0_12] : memref<12x128xf32, #tpu.memory_space<vmem>>, vector<1x128xf32>
    %34 = vector.shape_cast %32 : vector<1x128xf32> to vector<1x128xf32>
    %35 = vector.broadcast %34 : vector<1x128xf32> to vector<8x128xf32>
    %36 = vector.shape_cast %33 : vector<1x128xf32> to vector<1x128xf32>
    %37 = vector.broadcast %36 : vector<1x128xf32> to vector<8x128xf32>
    %38 = arith.select %5, %35, %37 : vector<8x128xi1>, vector<8x128xf32>
    %c8 = arith.constant 8 : index
    %c0_13 = arith.constant 0 : index
    %39 = vector.load %arg4[%c8, %c0_13] : memref<12x128xf32, #tpu.memory_space<vmem>>, vector<1x128xf32>
    %c9 = arith.constant 9 : index
    %c0_14 = arith.constant 0 : index
    %40 = vector.load %arg4[%c9, %c0_14] : memref<12x128xf32, #tpu.memory_space<vmem>>, vector<1x128xf32>
    %41 = vector.shape_cast %39 : vector<1x128xf32> to vector<1x128xf32>
    %42 = vector.broadcast %41 : vector<1x128xf32> to vector<8x128xf32>
    %43 = vector.shape_cast %40 : vector<1x128xf32> to vector<1x128xf32>
    %44 = vector.broadcast %43 : vector<1x128xf32> to vector<8x128xf32>
    %45 = arith.select %5, %42, %44 : vector<8x128xi1>, vector<8x128xf32>
    %46 = arith.select %3, %38, %45 : vector<8x128xi1>, vector<8x128xf32>
    %c10 = arith.constant 10 : index
    %c0_15 = arith.constant 0 : index
    %47 = vector.load %arg4[%c10, %c0_15] : memref<12x128xf32, #tpu.memory_space<vmem>>, vector<1x128xf32>
    %c11 = arith.constant 11 : index
    %c0_16 = arith.constant 0 : index
    %48 = vector.load %arg4[%c11, %c0_16] : memref<12x128xf32, #tpu.memory_space<vmem>>, vector<1x128xf32>
    %49 = vector.shape_cast %47 : vector<1x128xf32> to vector<1x128xf32>
    %50 = vector.broadcast %49 : vector<1x128xf32> to vector<8x128xf32>
    %51 = vector.shape_cast %48 : vector<1x128xf32> to vector<1x128xf32>
    %52 = vector.broadcast %51 : vector<1x128xf32> to vector<8x128xf32>
    %53 = arith.select %5, %50, %52 : vector<8x128xi1>, vector<8x128xf32>
    %54 = arith.select %8, %46, %53 : vector<8x128xi1>, vector<8x128xf32>
    %55 = arith.mulf %31, %0 : vector<8x128xf32>
    %56 = arith.mulf %54, %1 : vector<8x128xf32>
    %57 = arith.addf %55, %56 : vector<8x128xf32>
    %c0_17 = arith.constant 0 : index
    %c0_18 = arith.constant 0 : index
    %58 = vector.load %arg5[%c0_17, %c0_18] : memref<8x128xf32, #tpu.memory_space<vmem>>, vector<8x128xf32>
    tpu.vector_store %arg5[%c0_17, %c0_18], %57 {strides = array<i32>} : memref<8x128xf32, #tpu.memory_space<vmem>>, vector<8x128xf32>,
    return
  }
  func.func @transform_0(%arg0: i32, %arg1: i32) -> (i32, i32) {
    %c0_i32 = arith.constant 0 : i32
    return %arg1, %arg0 : i32, i32
  }
  func.func @transform_1(%arg0: i32, %arg1: i32) -> (i32, i32) {
    %c0_i32 = arith.constant 0 : i32
    return %arg1, %arg0 : i32, i32
  }
  func.func @transform_2(%arg0: i32, %arg1: i32) -> (i32, i32) {
    %c0_i32 = arith.constant 0 : i32
    %c0_i32_0 = arith.constant 0 : i32
    return %c0_i32, %arg0 : i32, i32
  }
  func.func @transform_3(%arg0: i32, %arg1: i32) -> (i32, i32) {
    %c0_i32 = arith.constant 0 : i32
    return %arg1, %arg0 : i32, i32
  }
}

</mosaic_0001>

<bundles_post_ra>
// kernel: _pallas_forward.2
= control target key start
LH: loop header
LB: loop body
LE: loop exit
PB: predicated region body
PF: predicated region fallthrough
CT: control target
= control target key end

     0   :  { %8 = vsyncpa [#allocation3], 0  ;;  %s765_s0 = inlined_call_operand.vmem [shape: f32[12,128], index: 0, kind: input, shape index: {}]   ;;  %s766_s1 = inlined_call_operand.vmem [shape: f32[16,128,1], index: 1, kind: input, shape index: {}]   ;;  %s767_s2 = inlined_call_operand.vmem [shape: f32[16,128,1], index: 2, kind: input, shape index: {}]   ;;  %s768_s3 = inlined_call_operand.hbm [shape: f32[16,128], index: 3, kind: output, shape index: {}]  }
   0x1   :  { %10 = vsyncpa [#allocation3 + $0x1], 0  ;;  %s620_s12 = smov 0   ;;  %s622_s13 = smov 0  }
   0x2   :  { %s624_s14 = smov 0   ;;  %s626_s15 = smov 0  }
   0x3   :  { %s628_s16 = smov 0   ;;  %s630_s17 = smov 0  }
   0x4 LB: > { %s441_s18 = sadd.s32 4294967295, %s597_s17   ;;  %s442_s19 = sadd.s32 4294967294, %s597_s17   ;;  %s597_s17 = sphi %s630_s17, %s16_s17   ;;  %s593_s16 = sphi %s628_s16, %s775_s16   ;;  %s589_s15 = sphi %s626_s15, %s774_s15   ;;  %s585_s14 = sphi %s624_s14, %s773_s14   ;;  %s581_s13 = sphi %s622_s13, %s772_s13   ;;  %s577_s12 = sphi %s620_s12, %s771_s12  }
   0x5   : > { %s25_s20 = sadd.s32 1, %s593_s16  ;;  %s119_s21 = sadd.s32 1, %s585_s14 }
   0x6   : > { %p26_p0 = scmp.ge.s32.totalorder %s25_s20, 2  ;;  %p129_p1 = scmp.ne.s32.totalorder %s585_s14, %s581_s13 }
   0x7   : > { %p130_p2 = scmp.eq.s32.totalorder %s441_s18, 1  ;;  %p135_p3 = scmp.ne.s32.totalorder %s581_s13, %s577_s12 }
   0x8   : > { %s777_s20 = smov (%p26_p0, %s25_s20), 0  ;;  %p136_p5 = scmp.eq.s32.totalorder %s442_s19, 1 }
   0x9   : > { %p660_p4 = por %p130_p2, %p129_p1  ;;  %s114_s23 = ssub.s32 %s593_s16, %s777_s20 }
   0xa   : > { %p446_p6 = scmp.ge.s32.totalorder %s597_s17, 1  ;;  %p117_p7 = scmp.eq.s32.totalorder %s114_s23, 0 }
   0xb   : > { %p667_p8 = por %p136_p5, %p135_p3  ;;  %p181_p9 = scmp.lt.s32.totalorder %s597_s17, 3 }
   0xc   : > { %s673_s25 = scalar_select %p117_p7, %s585_s14, %s119_s21  }
   0xd   : > { %p182_p10 = pnand %p446_p6, %p181_p9 }
   0xe   : > { %p218_p11 = scmp.lt.s32.totalorder (!%p182_p10), %s589_s15, 1  ;;  %s215_s26 = sand.u32 (!%p182_p10), 1, %s581_s13  }
   0xf   : > { %185 = sbr.rel (%p182_p10) target bundleno = 47 (0x2f), region = 32  ;;  %s698_s19 = sshll.u32 (!%p182_p10), %s215_s26, 3 }
  0x10   : > { %s217_s4 = scalar_lea.vmem (!%p182_p10), [#allocation2], %s698_s19  ;;  %s599_s11 = smov (!%p182_p10), [#allocation2]  }
  0x11   : > { %s340_s5 = sshll.u32 (!%p182_p10), %s217_s4, 4  ;;  %s341_s5 = int_to_ptr.vmem [resolvable:$true] %s340_s5 }
  0x12   : > { %s521_s10 = scalar_lea.vmem (!%p182_p10), %s341_s5, 128 }
  0x13   : > { %p522_p12 = scmp.ne.s32.totalorder (!%p182_p10), %s341_s5, %s521_s10 }
  0x14   : > { %s219_s27 = scalar_select %p218_p11, %s589_s15, 1  ;;  %v450_v0 = vld [vmem:[%s765_s0] ss:$0 sm:$0xff]  ;;  %v451_v1 = vld [vmem:[%s765_s0 + $0x1] ss:$0 sm:$0xff] }
  0x15   : > { %v452_v2 = vld [vmem:[%s765_s0 + $0x2] ss:$0 sm:$0xff]  ;;  %v453_v3 = vld [vmem:[%s765_s0 + $0x3] ss:$0 sm:$0xff]  ;;  %v454_v4 = vld [vmem:[%s765_s0 + $0x4] ss:$0 sm:$0xff]  ;;  %p523_p13 = pnand %p522_p12, %p660_p4 }
  0x16   : > { %v455_v5 = vld [vmem:[%s765_s0 + $0x5] ss:$0 sm:$0xff]  ;;  %s448_s21 = sshll.u32 %s219_s27, 3  ;;  %v456_v6 = vld [vmem:[%s765_s0 + $0x6] ss:$0 sm:$0xff]  ;;  %s525_s27 = sshll.u32 %s599_s11, 4  ;;  %s526_s27 = int_to_ptr.vmem [resolvable:$false] %s525_s27 }
  0x17   : > { %v457_v7 = vld [vmem:[%s765_s0 + $0x7] ss:$0 sm:$0xff]  ;;  %s224_s6 = scalar_lea.vmem %s767_s2, %s448_s21  ;;  %s231_s9 = scalar_lea.vmem %s766_s1, %s448_s21  ;;  %v458_v8 = vld [vmem:[%s765_s0 + $0x8] ss:$0 sm:$0xff]  ;;  %v459_v9 = vld [vmem:[%s765_s0 + $0x9] ss:$0 sm:$0xff] }
  0x18   : > { %v460_v10 = vld [vmem:[%s765_s0 + $0xa] ss:$0 sm:$0xff]  ;;  %v236_v11 = vld [vmem:[%s224_s6] sm:$0xff]  ;;  %v461_v13 = vld [vmem:[%s765_s0 + $0xb] ss:$0 sm:$0xff]  ;;  %s463_s21 = sshll.u32 %s589_s15, 7  ;;  %p524_p0 = pneg %p523_p13 }
  0x19   : > { %v240_v12 = vld [vmem:[%s231_s9] sm:$0xff]  ;;  %vm246_vm0 = vcmp.ge.f32.partialorder %v236_v11, 0.0  ;;  %v248_v14 = vand.u32 2147483647, %v236_v11  ;;  %s338_s8 = scalar_lea.hbm %s768_s3, %s463_s21  ;;  %s326_s9 = scalar_lea.sflag [#allocation3], %s215_s26 }
  0x1a   : > { %vm247_vm1 = vcmp.ge.f32.partialorder %v240_v12, 0.0  ;;  %v249_v15 = vand.u32 2147483647, %v240_v12  ;;  %v261_v16 = vsel %vm246_vm0, %v450_v0, %v451_v1  ;;  %s527_s15 = scalar_lea.vmem %s526_s27, 256  ;;  %p528_p1 = scmp.lt.s32.totalorder %s341_s5, %s526_s27 }
  0x1b   : > { %v272_v17 = vsel %vm247_vm1, %v452_v2, %v453_v3  ;;  %v283_v18 = vsel %vm247_vm1, %v454_v4, %v455_v5  ;;  %v296_v19 = vsel %vm247_vm1, %v456_v6, %v457_v7  ;;  %v307_v21 = vsel %vm247_vm1, %v458_v8, %v459_v9  ;;  %p529_p2 = scmp.lt.s32.totalorder %s527_s15, %s521_s10 }
  0x1c   : > { %vm250_vm2 = vcmp.ge.f32.partialorder %v248_v14, %v249_v15  ;;  %v284_v20 = vsel %vm246_vm0, %v272_v17, %v283_v18  ;;  %v319_v22 = vsel %vm247_vm1, %v460_v10, %v461_v13  ;;  %v308_v24 = vsel %vm246_vm0, %v296_v19, %v307_v21 }
  0x1d   : > { %v285_v23 = vsel %vm250_vm2, %v261_v16, %v284_v20  ;;  %v320_v25 = vsel %vm250_vm2, %v308_v24, %v319_v22  ;;  %p530_p3 = por %p529_p2, %p528_p1 }
  0x1e   : > { %v321_v26 = vmul.f32 %v285_v23, %v236_v11  ;;  %v322_v27 = vmul.f32 %v320_v25, %v240_v12 }
  0x1f   : > { %p531_p5 = pnand %p530_p3, %p524_p0 }
  0x20   : > { %v323_v28 = vadd.f32 %v322_v27, %v321_v26 }
  0x22   : > { %324 = vst [vmem:[%s217_s4] sm:$0xff] %v323_v28 }
  0x23   : > { %534 = shalt.err (!%p531_p5)
}
  0x24   : > { %s535_s19 = scalar_lea.hbm %s338_s8, 128  ;;  %s539_s23 = scalar_lea.hbm %s768_s3, 256 }
  0x25   : > { %p536_p6 = scmp.ne.s32.totalorder %s338_s8, %s535_s19  ;;  %p540_p10 = scmp.lt.s32.totalorder %s338_s8, %s768_s3 }
  0x26   : > { %p541_p11 = scmp.lt.s32.totalorder %s539_s23, %s535_s19 }
  0x27   : > { %p537_p7 = pnand %p536_p6, %p660_p4 }
  0x28   : > { %p542_p12 = por %p541_p11, %p540_p10 }
  0x29   : > { %p538_p9 = pneg %p537_p7 }
  0x2b   : > { %p543_p13 = pnand %p542_p12, %p538_p9 }
  0x2d   : > { %546 = shalt.err (!%p543_p13)
}
  0x2e   : > { %466 = dma.vmem_to_hbm [thread:$0]  (%p660_p4), %s341_s5, 128, %s338_s8, %s326_s9  }
  0x2f PF: > { %p472_p0 = scmp.ge.s32.totalorder %s597_s17, 2  ;;  %s352_s30 = sand.u32 1, %s577_s12  }
  0x30   : > { %s353_s21 = scalar_lea.sflag [#allocation3], %s352_s30 }
  0x31   : > { %p469_p1 = pnand %p472_p0, %p667_p8 }
  0x33   : > { %p470_p2 = pneg %p469_p1 }
  0x35   : > { %572 = dma.done.wait (%p470_p2), %s353_s21, 128  }
  0x36   : > { %574 = vsyncadd (%p470_p2), %s353_s21, 4294967168  ;;  %s16_s17 = sadd.s32 1, %s597_s17   ;;  %s771_s12 = smov %s581_s13 }
  0x37   : > { %p13_p3 = scmp.ge.s32.totalorder %s16_s17, 4   ;;  %s772_s13 = smov %s585_s14 }
  0x38   : > { %s773_s14 = smov %s673_s25  ;;  %s774_s15 = smov %s593_s16 }
  0x39   : > { %s775_s16 = smov %s777_s20  ;;  %15 = sbr.rel (!%p13_p3) target bundleno = 4 (0x4), region = 73 }
  0x3e   :  { %358 = vsyncpa [#allocation3], 1 }
  0x3f   :  { %360 = vsyncpa [#allocation3 + $0x1], 1 }

</bundles_post_ra>
